<compile_context>
chip_gen: v7x
topology: tpu7x:2x2x1
jax: 0.10.0
libtpu: 0.0.40
codegen_flags: <defaults>
</compile_context>

<pallas_src>
import math
import jax
import jax.numpy as jnp
from jax.experimental import pallas as pl
from jax.experimental.pallas import tpu as pltpu


# ---------------------------------------------------------------------------
# Parameter setup (plain JAX glue, equivalent to the PyTorch register_buffer).
# ---------------------------------------------------------------------------
def make_positional_encoding(d_model: int, max_len: int = 5000) -> jnp.ndarray:
    """Deterministic sinusoidal PE table of shape (max_len, d_model), float32."""
    position = jnp.arange(max_len, dtype=jnp.float32)[:, None]            # (max_len, 1)
    div_term = jnp.exp(
        jnp.arange(0, d_model, 2, dtype=jnp.float32) * (-math.log(10000.0) / d_model)
    )                                                                      # (d_model//2,)
    angles = position * div_term                                           # (max_len, d/2)
    # interleave: even cols = sin, odd cols = cos (matches PyTorch for even d_model)
    # TODO(synk): odd d_model handled differently by PyTorch (trailing column); not supported here.
    pe = jnp.stack([jnp.sin(angles), jnp.cos(angles)], axis=-1)            # (max_len, d/2, 2)
    pe = pe.reshape(max_len, d_model)
    return pe.astype(jnp.float32)


# ---------------------------------------------------------------------------
# Kernel (shared by both paths): out = (x + pe).astype(out.dtype), pe broadcast
# over the leading (batch) axis of the x block.
# ---------------------------------------------------------------------------
def _pe_add_kernel(x_ref, pe_ref, o_ref):
    o_ref[...] = (
        x_ref[...].astype(jnp.float32) + pe_ref[...].astype(jnp.float32)
    ).astype(o_ref.dtype)


# ---------------------------------------------------------------------------
# Generation-aware tile / VMEM budgets
# ---------------------------------------------------------------------------
_MIB = 1024 * 1024


def _vmem_capacity_bytes() -> int:
    """Physical VMEM per TensorCore; conservative fallback if the query fails."""
    try:
        info = pltpu.get_tpu_info()
        for attr in ("vmem_capacity_bytes", "vmem_size_bytes", "vmem_bytes"):
            v = getattr(info, attr, None)
            if v:
                return int(v)
    except Exception:
        pass
    return 64 * _MIB  # v7x-sized conservative default


def _tile_budget():
    """Returns (target block bytes, vmem_limit_bytes) for the current chip."""
    vmem = _vmem_capacity_bytes()
    if vmem >= 96 * _MIB:
        # v5e / v6e: 128 MiB physical.  v5e's scoped default is only 16 MiB,
        # so the explicit limit below is what makes the 4 MiB blocks legal.
        return 4 * _MIB, 64 * _MIB
    # v7x: 64 MiB physical -> smaller blocks, stay under the 32 MiB scoped default.
    return 2 * _MIB, 32 * _MIB


# ---------------------------------------------------------------------------
# Path B: lane-dense D (D % 128 == 0), tile the sequence axis.
#   grid = (seq_tiles, B): seq outer / batch inner -> each pe tile stays
#   resident across the batch axis (pe HBM traffic ~ S*D, not B*S*D).
# ---------------------------------------------------------------------------
def _pe_add_seq_tiled(x, pe_full, block_bytes, vmem_limit):
    B, S, D = x.shape
    itemsize = jnp.dtype(x.dtype).itemsize

    rows_target = max(8, block_bytes // max(1, D * itemsize))
    T = min((S // 8) * 8, max(8, (rows_target // 8) * 8))  # multiple of 8, <= S
    n_seq = pl.cdiv(S, T)  # last block is clipped by Pallas

    return pl.pallas_call(
        _pe_add_kernel,
        out_shape=jax.ShapeDtypeStruct((B, S, D), x.dtype),
        grid_spec=pltpu.PrefetchScalarGridSpec(
            num_scalar_prefetch=0,
            grid=(n_seq, B),
            in_specs=[
                pl.BlockSpec((1, T, D), lambda s, b: (b, s, 0)),
                pl.BlockSpec((T, D), lambda s, b: (s, 0)),  # reads pe_full rows directly
            ],
            out_specs=pl.BlockSpec((1, T, D), lambda s, b: (b, s, 0)),
        ),
        compiler_params=pltpu.CompilerParams(
            dimension_semantics=("parallel", "parallel"),
            vmem_limit_bytes=vmem_limit,
        ),
    )(x, pe_full)


# ---------------------------------------------------------------------------
# Path A: small / ragged D -> flatten (S, D) into one lane-dense axis of size
# S*D and tile BOTH axes:  grid = (col_tiles, row_tiles), column outer / rows
# inner so the pe column-block stays resident across batch row-tiles.
# ---------------------------------------------------------------------------
def _pe_add_flat(x, pe_full, block_bytes, vmem_limit):
    B, S, D = x.shape
    cols = S * D
    itemsize = jnp.dtype(x.dtype).itemsize
    target_elems = max(128, block_bytes // itemsize)

    x2 = x.reshape(B, cols)                      # metadata-only (contiguous)
    pe2 = pe_full.reshape(1, pe_full.shape[0] * D)  # (1, max_len*D), metadata-only

    if B * cols * itemsize <= block_bytes:
        # Whole problem fits in one block (full-extent dims are always legal).
        Br, Tc = B, cols
    else:
        if cols >= 128:
            tc_cap = max(128, ((target_elems // 8) // 128) * 128)
            Tc = min((cols // 128) * 128, tc_cap)
        else:
            Tc = cols  # full extent (< 128): legal, masked stores unavoidable
        Br = target_elems // max(1, Tc)
        if Br >= B:
            Br = B
        else:
            Br = min(max(8, (Br // 8) * 8), B)

    n_col = pl.cdiv(cols, Tc)
    n_row = pl.cdiv(B, Br)

    out = pl.pallas_call(
        _pe_add_kernel,
        out_shape=jax.ShapeDtypeStruct((B, cols), x.dtype),
        grid_spec=pltpu.PrefetchScalarGridSpec(
            num_scalar_prefetch=0,
            grid=(n_col, n_row),
            in_specs=[
                pl.BlockSpec((Br, Tc), lambda j, r: (r, j)),
                pl.BlockSpec((1, Tc), lambda j, r: (0, j)),
            ],
            out_specs=pl.BlockSpec((Br, Tc), lambda j, r: (r, j)),
        ),
        compiler_params=pltpu.CompilerParams(
            dimension_semantics=("parallel", "parallel"),
            vmem_limit_bytes=vmem_limit,
        ),
    )(x2, pe2)
    return out.reshape(B, S, D)


# ---------------------------------------------------------------------------
# Public forward: x (B, S, D) + pe_full[:S] broadcast over batch.
# ---------------------------------------------------------------------------
def sequence_positional_encoding(x: jnp.ndarray, pe_full: jnp.ndarray) -> jnp.ndarray:
    B, S, D = x.shape
    block_bytes, vmem_limit = _tile_budget()

    if D % 128 == 0 and S >= 8:
        return _pe_add_seq_tiled(x, pe_full, block_bytes, vmem_limit)
    return _pe_add_flat(x, pe_full, block_bytes, vmem_limit)


# ---------------------------------------------------------------------------
# Self-test
# ---------------------------------------------------------------------------
if __name__ == "__main__":
    key = jax.random.PRNGKey(0)

    # Test 1: module-consistent small shape (batch=2, seq=8, d_model=32) -> flat path
    B, S, D = 2, 8, 32
    max_len = 64
    x = jax.random.normal(key, (B, S, D), dtype=jnp.float32)
    pe_full = make_positional_encoding(D, max_len)
    out = jax.block_until_ready(sequence_positional_encoding(x, pe_full))
    ref = x + pe_full[None, :S, :]
    assert out.shape == (B, S, D)
    assert jnp.allclose(out, ref, atol=1e-6), "mismatch vs reference (flat path)"

    # Test 2: lane-dense d_model (128) -> sequence-tiled path
    B2, S2, D2 = 2, 16, 128
    x2 = jax.random.normal(jax.random.PRNGKey(0), (B2, S2, D2), dtype=jnp.float32)
    pe_full2 = make_positional_encoding(D2, 64)
    out2 = jax.block_until_ready(sequence_positional_encoding(x2, pe_full2))
    ref2 = x2 + pe_full2[None, :S2, :]
    assert out2.shape == (B2, S2, D2)
    assert jnp.allclose(out2, ref2, atol=1e-6), "mismatch vs reference (seq-tiled path)"

    print("KERNEL_OK")
</pallas_src>

<mosaic_0001>
module attributes {stable_mosaic.version = 11 : i64} {
  func.func @_pe_add_kernel(%arg0: i32, %arg1: i32, %arg2: memref<2x256xf32, #tpu.memory_space<vmem>>, %arg3: memref<1x256xf32, #tpu.memory_space<vmem>>, %arg4: memref<2x256xf32, #tpu.memory_space<vmem>>) attributes {dimension_semantics = [#tpu.dimension_semantics<parallel>, #tpu.dimension_semantics<parallel>], iteration_bounds = array<i64: 1, 1>, scalar_prefetch = 0 : i64, scratch_operands = 0 : i64, tpu.core_type = #tpu.core_type<tc>, window_params = [{transform_indices = @transform_0, window_bounds = array<i64: 2, 256>}, {transform_indices = @transform_1, window_bounds = array<i64: 1, 256>}, {transform_indices = @transform_2, window_bounds = array<i64: 2, 256>}]} {
    %c0 = arith.constant 0 : index
    %c0_0 = arith.constant 0 : index
    %0 = vector.load %arg2[%c0, %c0_0] : memref<2x256xf32, #tpu.memory_space<vmem>>, vector<2x256xf32>
    %c0_1 = arith.constant 0 : index
    %c0_2 = arith.constant 0 : index
    %1 = vector.load %arg3[%c0_1, %c0_2] : memref<1x256xf32, #tpu.memory_space<vmem>>, vector<1x256xf32>
    %2 = vector.broadcast %1 : vector<1x256xf32> to vector<2x256xf32>
    %3 = arith.addf %0, %2 : vector<2x256xf32>
    %c0_3 = arith.constant 0 : index
    %c0_4 = arith.constant 0 : index
    %4 = vector.load %arg4[%c0_3, %c0_4] : memref<2x256xf32, #tpu.memory_space<vmem>>, vector<2x256xf32>
    tpu.vector_store %arg4[%c0_3, %c0_4], %3 {strides = array<i32>} : memref<2x256xf32, #tpu.memory_space<vmem>>, vector<2x256xf32>,
    return
  }
  func.func @transform_0(%arg0: i32, %arg1: i32) -> (i32, i32) {
    %c0_i32 = arith.constant 0 : i32
    return %arg1, %arg0 : i32, i32
  }
  func.func @transform_1(%arg0: i32, %arg1: i32) -> (i32, i32) {
    %c0_i32 = arith.constant 0 : i32
    %c0_i32_0 = arith.constant 0 : i32
    return %c0_i32, %arg0 : i32, i32
  }
  func.func @transform_2(%arg0: i32, %arg1: i32) -> (i32, i32) {
    %c0_i32 = arith.constant 0 : i32
    return %arg1, %arg0 : i32, i32
  }
}

</mosaic_0001>

<bundles_post_ra>
// kernel: tpu_custom_call.1
= control target key start
LH: loop header
LB: loop body
LE: loop exit
PB: predicated region body
PF: predicated region fallthrough
CT: control target
= control target key end

     0   :  { %7 = vsyncpa [#allocation3], 0  ;;  %s215_s0 = inlined_call_operand.hbm [shape: f32[2,256], index: 0, kind: input, shape index: {}]   ;;  %s216_s1 = inlined_call_operand.hbm [shape: f32[1,2048], index: 1, kind: input, shape index: {}]   ;;  %s217_s2 = inlined_call_operand.hbm [shape: f32[2,256], index: 2, kind: output, shape index: {}]  }
   0x1   :  { %8 = vsyncpa [#allocation6], 0 }
   0x2   :  { %9 = vsyncpa [#allocation4], 0  ;;  %s150_s9 = smov [#allocation2]   ;;  %s151_s11 = smov [#allocation5]  }
   0x3   :  { %s16_s10 = sshll.u32 %s150_s9, 4  ;;  %s26_s12 = sshll.u32 %s151_s11, 4  ;;  %s17_s10 = int_to_ptr.vmem [resolvable:$true] %s16_s10  ;;  %s169_s12 = int_to_ptr.vmem [resolvable:$true] %s26_s12 }
   0x4   :  { %s78_s15 = scalar_lea.hbm %s215_s0, 64 }
   0x5   :  { %p79_p0 = scmp.ne.s32.totalorder %s215_s0, %s78_s15  ;;  %p82_p1 = scmp.lt.u32.totalorder %s78_s15, %s215_s0 }
   0x7   :  { %p84_p2 = pnand %p82_p1, %p79_p0 }
   0x9   :  { %87 = shalt.err (!%p84_p2)
}
   0xa   :  { %s88_s20 = scalar_lea.vmem %s17_s10, 64  ;;  %p93_p4 = scmp.lt.s32.totalorder %s17_s10, %s17_s10 }
   0xb   :  { %p89_p3 = scmp.ne.s32.totalorder %s17_s10, %s88_s20  ;;  %p94_p5 = scmp.lt.s32.totalorder %s88_s20, %s88_s20 }
   0xd   :  { %p95_p6 = por %p94_p5, %p93_p4 }
   0xf   :  { %p96_p7 = pnand %p95_p6, %p89_p3 }
  0x11   :  { %99 = shalt.err (!%p96_p7)
}
  0x12   :  { %19 = dma.hbm_to_vmem [thread:$0]  %s215_s0, 64, %s17_s10, [#allocation3]  }
  0x13   :  { %s100_s25 = scalar_lea.hbm %s216_s1, 32  ;;  %s102_s30 = scalar_lea.hbm %s216_s1, 256 }
  0x14   :  { %p101_p8 = scmp.ne.s32.totalorder %s216_s1, %s100_s25  ;;  %p103_p9 = scmp.lt.u32.totalorder %s102_s30, %s100_s25 }
  0x15   :  { %p104_p10 = scmp.lt.u32.totalorder %s100_s25, %s216_s1 }
  0x17   :  { %p105_p11 = por %p104_p10, %p103_p9 }
  0x19   :  { %p106_p12 = pnand %p105_p11, %p101_p8 }
  0x1b   :  { %109 = shalt.err (!%p106_p12)
}
  0x1c   :  { %s110_s0 = scalar_lea.vmem %s169_s12, 32  ;;  %p115_p0 = scmp.lt.s32.totalorder %s169_s12, %s169_s12 }
  0x1d   :  { %p111_p13 = scmp.ne.s32.totalorder %s169_s12, %s110_s0  ;;  %p116_p1 = scmp.lt.s32.totalorder %s110_s0, %s110_s0 }
  0x1f   :  { %p117_p2 = por %p116_p1, %p115_p0 }
  0x21   :  { %p118_p3 = pnand %p117_p2, %p111_p13 }
  0x23   :  { %121 = shalt.err (!%p118_p3)
}
  0x24   :  { %29 = dma.hbm_to_vmem [thread:$0]  %s216_s1, 32, %s169_s12, [#allocation6]  }
  0x25   :  { %144 = dma.done.wait [#allocation3], 64  }
  0x26   :  { %145 = vsyncadd [#allocation3], 4294967232 }
  0x27   :  { %146 = dma.done.wait [#allocation6], 32  }
  0x28   :  { %147 = vsyncadd [#allocation6], 4294967264  ;;  %v39_v0 = vlaneseq  ;;  %v152_v1 = vmov 1983009808   ;;  %v37_v7 = vld [vmem:[#allocation5] sm:$0x3] }
  0x29   :  { %v49_v2 = vunpack.c.l.s4 %v152_v1  ;;  %v36_v12 = vld [vmem:[#allocation2] sm:$0xf]  ;;  %s153_s7 = smov [#allocation7]  }
  0x2a   :  { %v40_v3 = vshrl.u32 %v39_v0, 7  ;;  %s64_s8 = sshll.u32 %s153_s7, 4  ;;  %s65_s8 = int_to_ptr.vmem [resolvable:$true] %s64_s8 }
  0x2b   :  { %v50_v6 = vunpack.c.0.s8 %v49_v2  ;;  %s122_s1 = scalar_lea.vmem %s65_s8, 64  ;;  %p127_p5 = scmp.lt.s32.totalorder %s65_s8, %s65_s8 }
  0x2c   :  { %v41_v4 = vsub.s32 0, %v40_v3  ;;  %v45_v5 = vsub.s32 1, %v40_v3  ;;  %p123_p4 = scmp.ne.s32.totalorder %s65_s8, %s122_s1  ;;  %p128_p6 = scmp.lt.s32.totalorder %s122_s1, %s122_s1 }
  0x2d   :  { %v53_v10 = vsub.s32 %v50_v6, %v40_v3 }
  0x2e   :  { %v42_v8 = vrot.slane %v37_v7, %v41_v4  ;;  %v46_v9 = vrot.slane %v37_v7, %v45_v5  ;;  %p129_p7 = por %p128_p6, %p127_p5 }
  0x30   :  { %v47_v11 = vcombine.low %v42_v8, %v46_v9  ;;  %p130_p8 = pnand %p129_p7, %p123_p4 }
  0x32   :  { %v54_v13 = vrot.slane %v47_v11, %v53_v10 }
  0x34   :  { %v56_v14 = vadd.f32 %v54_v13, %v36_v12 }
  0x36   :  { %57 = vst [vmem:[#allocation7] sm:$0xf] %v56_v14 }
  0x37   :  { %133 = shalt.err (!%p130_p8)
}
  0x38   :  { %s134_s11 = scalar_lea.hbm %s217_s2, 64 }
  0x39   :  { %p135_p9 = scmp.ne.s32.totalorder %s217_s2, %s134_s11  ;;  %p138_p10 = scmp.lt.u32.totalorder %s134_s11, %s217_s2 }
  0x3b   :  { %p140_p11 = pnand %p138_p10, %p135_p9 }
  0x3d   :  { %143 = shalt.err (!%p140_p11)
}
  0x3e   :  { %67 = dma.vmem_to_hbm [thread:$0]  %s65_s8, 64, %s217_s2, [#allocation4]  }
  0x3f   :  { %148 = dma.done.wait [#allocation4], 64  }
  0x40   :  { %149 = vsyncadd [#allocation4], 4294967232 }
  0x41   :  { %71 = vsyncpa [#allocation3], 1 }
  0x42   :  { %72 = vsyncpa [#allocation6], 1 }
  0x43   :  { %73 = vsyncpa [#allocation4], 1 }

</bundles_post_ra>
